<compile_context>
chip_gen: v5e
topology: v5e:2x2
jax: 0.10.0
libtpu: 0.0.40
codegen_flags: <defaults>
</compile_context>

<pallas_src>
import functools

import jax
import jax.numpy as jnp
from jax.experimental import pallas as pl
from jax.experimental.pallas import tpu as pltpu


def _round_up(x, m):
    return ((x + m - 1) // m) * m


def _pick_block_rows(batch, *, cap=2048, min_tiles=2):
    """Batch-tile rows: multiple of 8 (f32 sublane), <= cap, and (when the batch
    allows it) small enough that the grid has >= min_tiles steps so v7x's two
    TensorCores both get work under the "parallel" batch axis."""
    rows = _round_up(max(batch, 1), 8)
    per_tile = _round_up(pl.cdiv(rows, min_tiles), 8)
    return int(max(8, min(cap, per_tile)))


def _mlp_fused_kernel(*refs, relu_flags):
    """Whole MLP on one batch tile.

    refs = (x_ref, w0_ref, b0_ref, w1_ref, b1_ref, ..., o_ref)
      x_ref:  [tm, Din]   f32   (VMEM, batch-tiled)
      wi_ref: [Di, Di+1]  bf16  (VMEM, resident across batch tiles)
      bi_ref: [1, Di+1]   f32
      o_ref:  [tm, Dout]  f32
    Intermediate activations never leave VMEM/vregs.
    """
    x_ref = refs[0]
    o_ref = refs[-1]
    wb_refs = refs[1:-1]

    h = x_ref[...].astype(jnp.float32)
    for i, relu in enumerate(relu_flags):
        w = wb_refs[2 * i][...]        # bf16 operand (pre-cast in the wrapper)
        b = wb_refs[2 * i + 1][...]    # f32 bias
        # bf16 x bf16 -> f32 accumulation on the MXU; epilogue stays f32 on the VPU.
        h = jnp.dot(h.astype(jnp.bfloat16), w,
                    preferred_element_type=jnp.float32) + b
        if relu:
            h = jnp.maximum(h, 0.0)
    o_ref[...] = h.astype(o_ref.dtype)


def mlp_forward_pallas(x, params, *, block_rows=None):
    """Fused MLP forward. Tiles only the batch axis; weights are full-extent,
    VMEM-resident blocks.

    params: list of (w [Din, Dout], b [Dout], apply_relu: bool)
    """
    batch, input_dim = x.shape
    dims = [input_dim] + [w.shape[1] for w, _, _ in params]
    out_dim = dims[-1]
    relu_flags = tuple(bool(r) for _, _, r in params)

    if block_rows is None:
        block_rows = _pick_block_rows(batch)
    grid = (pl.cdiv(batch, block_rows),)

    # Pre-cast weights to bf16 once (not per grid step); biases stay f32.
    # (For real deployments, keep the weights stored in bf16 to skip even this.)
    call_args = [x]
    wb_shapes = []
    for w, b, _ in params:
        din, dout = w.shape
        call_args.append(w.astype(jnp.bfloat16))
        call_args.append(b.astype(jnp.float32).reshape(1, dout))
        wb_shapes.append((din, dout))

    # Advisory cost estimate for XLA's scheduler.
    flops = 2 * batch * sum(dims[i] * dims[i + 1] for i in range(len(dims) - 1))
    bytes_accessed = (
        4 * batch * input_dim                               # x read (f32)
        + 4 * batch * out_dim                               # out write (f32)
        + sum(2 * d0 * d1 + 4 * d1 for d0, d1 in wb_shapes)  # bf16 W + f32 b
    )

    kernel = functools.partial(_mlp_fused_kernel, relu_flags=relu_flags)

    def _call(single_buffer_weights):
        const_kwargs = {}
        if single_buffer_weights:
            # Constant index_map blocks never change -> a second VMEM buffer is waste.
            const_kwargs["pipeline_mode"] = pl.Buffered(1)
        in_specs = [pl.BlockSpec((block_rows, input_dim), lambda i: (i, 0))]
        for din, dout in wb_shapes:
            in_specs.append(pl.BlockSpec((din, dout), lambda i: (0, 0), **const_kwargs))
            in_specs.append(pl.BlockSpec((1, dout), lambda i: (0, 0), **const_kwargs))
        return pl.pallas_call(
            kernel,
            out_shape=jax.ShapeDtypeStruct((batch, out_dim), jnp.float32),
            grid=grid,
            in_specs=in_specs,
            out_specs=pl.BlockSpec((block_rows, out_dim), lambda i: (i, 0)),
            compiler_params=pltpu.CompilerParams(
                # Batch tiles are independent -> "parallel"; grid is chosen >= 2
                # steps when batch >= 16 so v7x's 2 TCs both get work.
                dimension_semantics=("parallel",),
            ),
            cost_estimate=pl.CostEstimate(
                flops=flops, transcendentals=0, bytes_accessed=bytes_accessed
            ),
        )(*call_args)

    if hasattr(pl, "Buffered"):
        try:
            return _call(single_buffer_weights=True)
        except Exception:
            pass  # pipeline_mode=Buffered(1) unsupported here -> default buffering.
    return _call(single_buffer_weights=False)


def init_mlp_params(key, input_dim, hidden_units, output_dim):
    """Deterministic parameter init (uniform(-1/sqrt(fan_in), 1/sqrt(fan_in)),
    like PyTorch's nn.Linear default)."""
    dims = [input_dim] + list(hidden_units)
    params = []
    for idx in range(len(dims) - 1):
        key, kw, kb = jax.random.split(key, 3)
        fan_in, fan_out = dims[idx], dims[idx + 1]
        bound = 1.0 / jnp.sqrt(fan_in)
        w = jax.random.uniform(kw, (fan_in, fan_out), jnp.float32, -bound, bound)
        b = jax.random.uniform(kb, (fan_out,), jnp.float32, -bound, bound)
        params.append((w, b, True))   # ReLU after each hidden linear
    if output_dim is not None:
        key, kw, kb = jax.random.split(key, 3)
        fan_in = dims[-1]
        bound = 1.0 / jnp.sqrt(fan_in)
        w = jax.random.uniform(kw, (fan_in, output_dim), jnp.float32, -bound, bound)
        b = jax.random.uniform(kb, (output_dim,), jnp.float32, -bound, bound)
        params.append((w, b, False))  # no activation on the output linear
    return params


def mlp_forward_ref_bf16(x, params):
    """Pure-JAX reference matching the kernel's numerics exactly:
    bf16 matmul operands, f32 accumulation, f32 bias/ReLU epilogue."""
    h = x.astype(jnp.float32)
    for w, b, relu in params:
        h = jnp.dot(h.astype(jnp.bfloat16), w.astype(jnp.bfloat16),
                    preferred_element_type=jnp.float32) + b
        if relu:
            h = jnp.maximum(h, 0.0)
    return h


if __name__ == "__main__":
    key = jax.random.PRNGKey(0)
    input_dim, hidden_units, output_dim = 32, [64, 64], 16

    key, kparams = jax.random.split(key)
    params = init_mlp_params(kparams, input_dim, hidden_units, output_dim)

    # batch=8: single even tile.  batch=24: 2-step grid with a ragged last tile
    # (exercises the no-pad masked-block path and the >=2-tile megacore split).
    for batch in (8, 24):
        kx = jax.random.fold_in(key, batch)
        x = jax.random.normal(kx, (batch, input_dim), dtype=jnp.float32)

        out = jax.block_until_ready(mlp_forward_pallas(x, params))
        ref = mlp_forward_ref_bf16(x, params)

        assert out.shape == (batch, output_dim)
        assert jnp.allclose(out, ref, atol=1e-2, rtol=1e-2), (
            f"mismatch vs reference at batch={batch}")

    print("KERNEL_OK")
</pallas_src>

<mosaic_0001>
module attributes {stable_mosaic.version = 11 : i64} {
  func.func @_mlp_fused_kernel(%arg0: i32, %arg1: memref<8x32xf32, #tpu.memory_space<vmem>>, %arg2: memref<32x64xbf16, #tpu.memory_space<vmem>>, %arg3: memref<1x64xf32, #tpu.memory_space<vmem>>, %arg4: memref<64x64xbf16, #tpu.memory_space<vmem>>, %arg5: memref<1x64xf32, #tpu.memory_space<vmem>>, %arg6: memref<64x16xbf16, #tpu.memory_space<vmem>>, %arg7: memref<1x16xf32, #tpu.memory_space<vmem>>, %arg8: memref<8x16xf32, #tpu.memory_space<vmem>>) attributes {dimension_semantics = [#tpu.dimension_semantics<parallel>], iteration_bounds = array<i64: 1>, scalar_prefetch = 0 : i64, scratch_operands = 0 : i64, tpu.core_type = #tpu.core_type<tc>, window_params = [{transform_indices = @transform_0, window_bounds = array<i64: 8, 32>}, {pipeline_mode = #tpu.pipeline_mode<synchronous>, transform_indices = @transform_1, window_bounds = array<i64: 32, 64>}, {pipeline_mode = #tpu.pipeline_mode<synchronous>, transform_indices = @transform_2, window_bounds = array<i64: 1, 64>}, {pipeline_mode = #tpu.pipeline_mode<synchronous>, transform_indices = @transform_3, window_bounds = array<i64: 64, 64>}, {pipeline_mode = #tpu.pipeline_mode<synchronous>, transform_indices = @transform_4, window_bounds = array<i64: 1, 64>}, {pipeline_mode = #tpu.pipeline_mode<synchronous>, transform_indices = @transform_5, window_bounds = array<i64: 64, 16>}, {pipeline_mode = #tpu.pipeline_mode<synchronous>, transform_indices = @transform_6, window_bounds = array<i64: 1, 16>}, {transform_indices = @transform_7, window_bounds = array<i64: 8, 16>}]} {
    %c0 = arith.constant 0 : index
    %c0_0 = arith.constant 0 : index
    %0 = vector.load %arg1[%c0, %c0_0] : memref<8x32xf32, #tpu.memory_space<vmem>>, vector<8x32xf32>
    %c0_1 = arith.constant 0 : index
    %c0_2 = arith.constant 0 : index
    %1 = vector.load %arg2[%c0_1, %c0_2] : memref<32x64xbf16, #tpu.memory_space<vmem>>, vector<32x64xbf16>
    %c0_3 = arith.constant 0 : index
    %c0_4 = arith.constant 0 : index
    %2 = vector.load %arg3[%c0_3, %c0_4] : memref<1x64xf32, #tpu.memory_space<vmem>>, vector<1x64xf32>
    %3 = arith.truncf %0 : vector<8x32xf32> to vector<8x32xbf16>
    %cst = arith.constant dense<0.000000e+00> : vector<8x64xf32>
    %4 = tpu.matmul %3, %1, %cst {dimension_numbers = #tpu.dot_dimension_numbers<[1], [0], [0], [1], [0, 0, 1, 1], [], []>} : vector<8x32xbf16>, vector<32x64xbf16>, vector<8x64xf32> -> vector<8x64xf32>
    %5 = vector.broadcast %2 : vector<1x64xf32> to vector<8x64xf32>
    %6 = arith.addf %4, %5 : vector<8x64xf32>
    %cst_5 = arith.constant 0.000000e+00 : f32
    %7 = vector.broadcast %cst_5 : f32 to vector<8x64xf32>
    %8 = arith.maximumf %6, %7 : vector<8x64xf32>
    %c0_6 = arith.constant 0 : index
    %c0_7 = arith.constant 0 : index
    %9 = vector.load %arg4[%c0_6, %c0_7] : memref<64x64xbf16, #tpu.memory_space<vmem>>, vector<64x64xbf16>
    %c0_8 = arith.constant 0 : index
    %c0_9 = arith.constant 0 : index
    %10 = vector.load %arg5[%c0_8, %c0_9] : memref<1x64xf32, #tpu.memory_space<vmem>>, vector<1x64xf32>
    %11 = arith.truncf %8 : vector<8x64xf32> to vector<8x64xbf16>
    %cst_10 = arith.constant dense<0.000000e+00> : vector<8x64xf32>
    %12 = tpu.matmul %11, %9, %cst_10 {dimension_numbers = #tpu.dot_dimension_numbers<[1], [0], [0], [1], [0, 0, 1, 1], [], []>} : vector<8x64xbf16>, vector<64x64xbf16>, vector<8x64xf32> -> vector<8x64xf32>
    %13 = vector.broadcast %10 : vector<1x64xf32> to vector<8x64xf32>
    %14 = arith.addf %12, %13 : vector<8x64xf32>
    %cst_11 = arith.constant 0.000000e+00 : f32
    %15 = vector.broadcast %cst_11 : f32 to vector<8x64xf32>
    %16 = arith.maximumf %14, %15 : vector<8x64xf32>
    %c0_12 = arith.constant 0 : index
    %c0_13 = arith.constant 0 : index
    %17 = vector.load %arg6[%c0_12, %c0_13] : memref<64x16xbf16, #tpu.memory_space<vmem>>, vector<64x16xbf16>
    %c0_14 = arith.constant 0 : index
    %c0_15 = arith.constant 0 : index
    %18 = vector.load %arg7[%c0_14, %c0_15] : memref<1x16xf32, #tpu.memory_space<vmem>>, vector<1x16xf32>
    %19 = arith.truncf %16 : vector<8x64xf32> to vector<8x64xbf16>
    %cst_16 = arith.constant dense<0.000000e+00> : vector<8x16xf32>
    %20 = tpu.matmul %19, %17, %cst_16 {dimension_numbers = #tpu.dot_dimension_numbers<[1], [0], [0], [1], [0, 0, 1, 1], [], []>} : vector<8x64xbf16>, vector<64x16xbf16>, vector<8x16xf32> -> vector<8x16xf32>
    %21 = vector.broadcast %18 : vector<1x16xf32> to vector<8x16xf32>
    %22 = arith.addf %20, %21 : vector<8x16xf32>
    %c0_17 = arith.constant 0 : index
    %c0_18 = arith.constant 0 : index
    %23 = vector.load %arg8[%c0_17, %c0_18] : memref<8x16xf32, #tpu.memory_space<vmem>>, vector<8x16xf32>
    tpu.vector_store %arg8[%c0_17, %c0_18], %22 {strides = array<i32>} : memref<8x16xf32, #tpu.memory_space<vmem>>, vector<8x16xf32>,
    return
  }
  func.func @transform_0(%arg0: i32) -> (i32, i32) {
    %c0_i32 = arith.constant 0 : i32
    %c0_i32_0 = arith.constant 0 : i32
    return %arg0, %c0_i32 : i32, i32
  }
  func.func @transform_1(%arg0: i32) -> (i32, i32) {
    %c0_i32 = arith.constant 0 : i32
    %c0_i32_0 = arith.constant 0 : i32
    %c0_i32_1 = arith.constant 0 : i32
    return %c0_i32, %c0_i32_0 : i32, i32
  }
  func.func @transform_2(%arg0: i32) -> (i32, i32) {
    %c0_i32 = arith.constant 0 : i32
    %c0_i32_0 = arith.constant 0 : i32
    %c0_i32_1 = arith.constant 0 : i32
    return %c0_i32, %c0_i32_0 : i32, i32
  }
  func.func @transform_3(%arg0: i32) -> (i32, i32) {
    %c0_i32 = arith.constant 0 : i32
    %c0_i32_0 = arith.constant 0 : i32
    %c0_i32_1 = arith.constant 0 : i32
    return %c0_i32, %c0_i32_0 : i32, i32
  }
  func.func @transform_4(%arg0: i32) -> (i32, i32) {
    %c0_i32 = arith.constant 0 : i32
    %c0_i32_0 = arith.constant 0 : i32
    %c0_i32_1 = arith.constant 0 : i32
    return %c0_i32, %c0_i32_0 : i32, i32
  }
  func.func @transform_5(%arg0: i32) -> (i32, i32) {
    %c0_i32 = arith.constant 0 : i32
    %c0_i32_0 = arith.constant 0 : i32
    %c0_i32_1 = arith.constant 0 : i32
    return %c0_i32, %c0_i32_0 : i32, i32
  }
  func.func @transform_6(%arg0: i32) -> (i32, i32) {
    %c0_i32 = arith.constant 0 : i32
    %c0_i32_0 = arith.constant 0 : i32
    %c0_i32_1 = arith.constant 0 : i32
    return %c0_i32, %c0_i32_0 : i32, i32
  }
  func.func @transform_7(%arg0: i32) -> (i32, i32) {
    %c0_i32 = arith.constant 0 : i32
    %c0_i32_0 = arith.constant 0 : i32
    return %arg0, %c0_i32 : i32, i32
  }
}

module attributes {stable_mosaic.version = 11 : i64} {
  func.func @_mlp_fused_kernel(%arg0: i32, %arg1: memref<8x32xf32, #tpu.memory_space<vmem>>, %arg2: memref<32x64xbf16, #tpu.memory_space<vmem>>, %arg3: memref<1x64xf32, #tpu.memory_space<vmem>>, %arg4: memref<64x64xbf16, #tpu.memory_space<vmem>>, %arg5: memref<1x64xf32, #tpu.memory_space<vmem>>, %arg6: memref<64x16xbf16, #tpu.memory_space<vmem>>, %arg7: memref<1x16xf32, #tpu.memory_space<vmem>>, %arg8: memref<8x16xf32, #tpu.memory_space<vmem>>) attributes {dimension_semantics = [#tpu.dimension_semantics<parallel>], iteration_bounds = array<i64: 1>, scalar_prefetch = 0 : i64, scratch_operands = 0 : i64, tpu.core_type = #tpu.core_type<tc>, window_params = [{transform_indices = @transform_0, window_bounds = array<i64: 8, 32>}, {pipeline_mode = #tpu.pipeline_mode<synchronous>, transform_indices = @transform_1, window_bounds = array<i64: 32, 64>}, {pipeline_mode = #tpu.pipeline_mode<synchronous>, transform_indices = @transform_2, window_bounds = array<i64: 1, 64>}, {pipeline_mode = #tpu.pipeline_mode<synchronous>, transform_indices = @transform_3, window_bounds = array<i64: 64, 64>}, {pipeline_mode = #tpu.pipeline_mode<synchronous>, transform_indices = @transform_4, window_bounds = array<i64: 1, 64>}, {pipeline_mode = #tpu.pipeline_mode<synchronous>, transform_indices = @transform_5, window_bounds = array<i64: 64, 16>}, {pipeline_mode = #tpu.pipeline_mode<synchronous>, transform_indices = @transform_6, window_bounds = array<i64: 1, 16>}, {transform_indices = @transform_7, window_bounds = array<i64: 8, 16>}]} {
    %c0 = arith.constant 0 : index
    %c0_0 = arith.constant 0 : index
    %0 = vector.load %arg1[%c0, %c0_0] : memref<8x32xf32, #tpu.memory_space<vmem>>, vector<8x32xf32>
    %c0_1 = arith.constant 0 : index
    %c0_2 = arith.constant 0 : index
    %1 = vector.load %arg2[%c0_1, %c0_2] : memref<32x64xbf16, #tpu.memory_space<vmem>>, vector<32x64xbf16>
    %c0_3 = arith.constant 0 : index
    %c0_4 = arith.constant 0 : index
    %2 = vector.load %arg3[%c0_3, %c0_4] : memref<1x64xf32, #tpu.memory_space<vmem>>, vector<1x64xf32>
    %3 = arith.truncf %0 : vector<8x32xf32> to vector<8x32xbf16>
    %cst = arith.constant dense<0.000000e+00> : vector<8x64xf32>
    %4 = tpu.matmul %3, %1, %cst {dimension_numbers = #tpu.dot_dimension_numbers<[1], [0], [0], [1], [0, 0, 1, 1], [], []>} : vector<8x32xbf16>, vector<32x64xbf16>, vector<8x64xf32> -> vector<8x64xf32>
    %5 = vector.broadcast %2 : vector<1x64xf32> to vector<8x64xf32>
    %6 = arith.addf %4, %5 : vector<8x64xf32>
    %cst_5 = arith.constant 0.000000e+00 : f32
    %7 = vector.broadcast %cst_5 : f32 to vector<8x64xf32>
    %8 = arith.maximumf %6, %7 : vector<8x64xf32>
    %c0_6 = arith.constant 0 : index
    %c0_7 = arith.constant 0 : index
    %9 = vector.load %arg4[%c0_6, %c0_7] : memref<64x64xbf16, #tpu.memory_space<vmem>>, vector<64x64xbf16>
    %c0_8 = arith.constant 0 : index
    %c0_9 = arith.constant 0 : index
    %10 = vector.load %arg5[%c0_8, %c0_9] : memref<1x64xf32, #tpu.memory_space<vmem>>, vector<1x64xf32>
    %11 = arith.truncf %8 : vector<8x64xf32> to vector<8x64xbf16>
    %cst_10 = arith.constant dense<0.000000e+00> : vector<8x64xf32>
    %12 = tpu.matmul %11, %9, %cst_10 {dimension_numbers = #tpu.dot_dimension_numbers<[1], [0], [0], [1], [0, 0, 1, 1], [], []>} : vector<8x64xbf16>, vector<64x64xbf16>, vector<8x64xf32> -> vector<8x64xf32>
    %13 = vector.broadcast %10 : vector<1x64xf32> to vector<8x64xf32>
    %14 = arith.addf %12, %13 : vector<8x64xf32>
    %cst_11 = arith.constant 0.000000e+00 : f32
    %15 = vector.broadcast %cst_11 : f32 to vector<8x64xf32>
    %16 = arith.maximumf %14, %15 : vector<8x64xf32>
    %c0_12 = arith.constant 0 : index
    %c0_13 = arith.constant 0 : index
    %17 = vector.load %arg6[%c0_12, %c0_13] : memref<64x16xbf16, #tpu.memory_space<vmem>>, vector<64x16xbf16>
    %c0_14 = arith.constant 0 : index
    %c0_15 = arith.constant 0 : index
    %18 = vector.load %arg7[%c0_14, %c0_15] : memref<1x16xf32, #tpu.memory_space<vmem>>, vector<1x16xf32>
    %19 = arith.truncf %16 : vector<8x64xf32> to vector<8x64xbf16>
    %cst_16 = arith.constant dense<0.000000e+00> : vector<8x16xf32>
    %20 = tpu.matmul %19, %17, %cst_16 {dimension_numbers = #tpu.dot_dimension_numbers<[1], [0], [0], [1], [0, 0, 1, 1], [], []>} : vector<8x64xbf16>, vector<64x16xbf16>, vector<8x16xf32> -> vector<8x16xf32>
    %21 = vector.broadcast %18 : vector<1x16xf32> to vector<8x16xf32>
    %22 = arith.addf %20, %21 : vector<8x16xf32>
    %c0_17 = arith.constant 0 : index
    %c0_18 = arith.constant 0 : index
    %23 = vector.load %arg8[%c0_17, %c0_18] : memref<8x16xf32, #tpu.memory_space<vmem>>, vector<8x16xf32>
    tpu.vector_store %arg8[%c0_17, %c0_18], %22 {strides = array<i32>} : memref<8x16xf32, #tpu.memory_space<vmem>>, vector<8x16xf32>,
    return
  }
  func.func @transform_0(%arg0: i32) -> (i32, i32) {
    %c0_i32 = arith.constant 0 : i32
    %c0_i32_0 = arith.constant 0 : i32
    return %arg0, %c0_i32 : i32, i32
  }
  func.func @transform_1(%arg0: i32) -> (i32, i32) {
    %c0_i32 = arith.constant 0 : i32
    %c0_i32_0 = arith.constant 0 : i32
    %c0_i32_1 = arith.constant 0 : i32
    return %c0_i32, %c0_i32_0 : i32, i32
  }
  func.func @transform_2(%arg0: i32) -> (i32, i32) {
    %c0_i32 = arith.constant 0 : i32
    %c0_i32_0 = arith.constant 0 : i32
    %c0_i32_1 = arith.constant 0 : i32
    return %c0_i32, %c0_i32_0 : i32, i32
  }
  func.func @transform_3(%arg0: i32) -> (i32, i32) {
    %c0_i32 = arith.constant 0 : i32
    %c0_i32_0 = arith.constant 0 : i32
    %c0_i32_1 = arith.constant 0 : i32
    return %c0_i32, %c0_i32_0 : i32, i32
  }
  func.func @transform_4(%arg0: i32) -> (i32, i32) {
    %c0_i32 = arith.constant 0 : i32
    %c0_i32_0 = arith.constant 0 : i32
    %c0_i32_1 = arith.constant 0 : i32
    return %c0_i32, %c0_i32_0 : i32, i32
  }
  func.func @transform_5(%arg0: i32) -> (i32, i32) {
    %c0_i32 = arith.constant 0 : i32
    %c0_i32_0 = arith.constant 0 : i32
    %c0_i32_1 = arith.constant 0 : i32
    return %c0_i32, %c0_i32_0 : i32, i32
  }
  func.func @transform_6(%arg0: i32) -> (i32, i32) {
    %c0_i32 = arith.constant 0 : i32
    %c0_i32_0 = arith.constant 0 : i32
    %c0_i32_1 = arith.constant 0 : i32
    return %c0_i32, %c0_i32_0 : i32, i32
  }
  func.func @transform_7(%arg0: i32) -> (i32, i32) {
    %c0_i32 = arith.constant 0 : i32
    %c0_i32_0 = arith.constant 0 : i32
    return %arg0, %c0_i32 : i32, i32
  }
}

</mosaic_0001>

<bundles_post_ra>
// kernel: tpu_custom_call.1
= control target key start
LH: loop header
LB: loop body
LE: loop exit
PB: predicated region body
PF: predicated region fallthrough
CT: control target
= control target key end

     0   :  { %12 = vsyncpa [#allocation3], 0  ;;  %s409_s0 = inlined_call_operand.vmem [shape: f32[8,32], index: 0, kind: input, shape index: {}]   ;;  %s410_s1 = inlined_call_operand.hbm [shape: bf16[32,64], index: 1, kind: input, shape index: {}]   ;;  %s411_s2 = inlined_call_operand.vmem [shape: f32[1,64], index: 2, kind: input, shape index: {}]   ;;  %s412_s3 = inlined_call_operand.vmem [shape: bf16[64,64], index: 3, kind: input, shape index: {}]   ;;  %s413_s4 = inlined_call_operand.vmem [shape: f32[1,64], index: 4, kind: input, shape index: {}]   ;;  %s414_s5 = inlined_call_operand.vmem [shape: bf16[64,16], index: 5, kind: input, shape index: {}]   ;;  %s415_s6 = inlined_call_operand.vmem [shape: f32[1,16], index: 6, kind: input, shape index: {}]   ;;  %s416_s7 = inlined_call_operand.hbm [shape: f32[8,16], index: 7, kind: output, shape index: {}]  }
   0x1   :  { %13 = vsyncpa [#allocation4], 0  ;;  %s20_s26 = sshll.u32 %s410_s1, 4  ;;  %s323_s27 = smov [#allocation2]   ;;  %s21_s26 = int_to_ptr.hbm [resolvable:$true] %s20_s26 }
   0x2   :  { %s22_s28 = sshll.u32 %s323_s27, 4  ;;  %s324_s29 = smov 64   ;;  %s23_s28 = int_to_ptr.vmem [resolvable:$true] %s22_s28 }
   0x3   :  { %s325_s30 = smov 4  }
   0x4   :  { %28 = dma.hbm_to_vmem [thread:$0]  %s21_s26, 256, %s23_s28, [#allocation3], %s324_s29, %s324_s29, %s325_s30  }
   0x5   :  { %319 = dma.done.wait [#allocation3], 256  }
   0x6   :  { %320 = vsyncadd [#allocation3], 4294967040  ;;  %v255_v0 = vld [vmem:[#allocation2 + $0x8] sm:$0xff]  ;;  %v254_v1 = vld [vmem:[#allocation2] sm:$0xff]  ;;  %vm66_vm0 = vcmask 261120   ;;  %vm121_vm1 = vcmask 523264  }
   0x7   :  { %v259_v2 = vld [vmem:[%s412_s3 + $0x18] sm:$0xff]  ;;  %76 = vmatpush.bf16.msra.mxu0 %v255_v0  ;;  %v44_v3 = vld [vmem:[%s409_s0] sm:$0xff]  ;;  %v258_v4 = vld [vmem:[%s412_s3 + $0x10] sm:$0xff]  ;;  %s326_s28 = smov [#allocation5]   ;;  %vm192_vm2 = vcmask 130048  }
   0x8   :  { %129 = vmatpush.bf16.msra.mxu1 %v259_v2  ;;  %v50_v5 = vpack.c.bf16 %v44_v3, %v44_v3  ;;  %v257_v6 = vld [vmem:[%s412_s3 + $0x8] sm:$0xff]  ;;  %v256_v7 = vld [vmem:[%s412_s3] sm:$0xff]  ;;  %v263_v8 = vld [vmem:[%s414_s5 + $0x18] sm:$0xff]  ;;  %s199_s29 = sshll.u32 %s326_s28, 4  ;;  %s200_s29 = int_to_ptr.vmem [resolvable:$true] %s199_s29 }
   0x9   :  { %183 = vmatpush.bf16.msra.mxu2 %v263_v8  ;;  %v262_v9 = vld [vmem:[%s414_s5 + $0x10] sm:$0xff]  ;;  %v268_v10 = vld [vmem:[%s411_s2] ss:$0 sm:$0xff]  ;;  %v261_v16 = vld [vmem:[%s414_s5 + $0x8] sm:$0xff] }
   0xa   :  { %v260_v17 = vld [vmem:[%s414_s5] sm:$0xff]  ;;  %s201_s5 = sshll.u32 %s416_s7, 4  ;;  %s202_s5 = int_to_ptr.hbm [resolvable:$true] %s201_s5 }
   0xb   :  { %77 = vmatpush.bf16.msra.mxu0 %v254_v1  ;;  %v269_v18 = vld [vmem:[%s413_s4] ss:$0 sm:$0xff] }
   0xc   :  { %130 = vmatpush.bf16.msra.mxu1 %v258_v4  ;;  %v270_v24 = vld [vmem:[%s415_s6] ss:$0 sm:$0xff] }
   0xd   :  { %184 = vmatpush.bf16.msra.mxu2 %v262_v9 }
   0xe   :  { %219 = vmatmul.msk.bf16.vlgmr.msra.gmra.mxu0 %vm66_vm0, %v50_v5 }
  0x10   :  { %131 = vmatpush.bf16.msra.mxu1 %v257_v6 }
  0x11   :  { %185 = vmatpush.bf16.msra.mxu2 %v261_v16 }
  0x14   :  { %132 = vmatpush.bf16.msra.mxu1 %v256_v7 }
  0x15   :  { %186 = vmatpush.bf16.msra.mxu2 %v260_v17 }
  0x8b   :  { %v79_v11 = vpop.f32.mrf.mxu0 }
  0x8c   :  { %v80_v12 = vadd.f32 %v268_v10, %v79_v11 }
  0x8e   :  { %v83_v13 = vmax.f32 %v80_v12, 0.0 }
  0x90   :  { %v93_v14 = vpack.c.bf16 %v83_v13, %v83_v13 }
  0x92   :  { %236 = vmatmul.msk.bf16.vlgmr.msra.gmra.mxu1 %vm121_vm1, %v93_v14 }
  0x93   :  { %v81_v15 = vpop.f32.mrf.mxu0 }
 0x10f   :  { %v134_v19 = vpop.f32.mrf.mxu1 }
 0x110   :  { %v135_v20 = vadd.f32 %v269_v18, %v134_v19 }
 0x112   :  { %v138_v21 = vmax.f32 %v135_v20, 0.0 }
 0x114   :  { %v148_v22 = vpack.c.bf16 %v138_v21, %v138_v21 }
 0x116   :  { %253 = vmatmul.msk.bf16.vlgmr.msra.gmra.mxu2 %vm121_vm1, %v148_v22 }
 0x117   :  { %v136_v23 = vpop.f32.mrf.mxu1 }
 0x199   :  { %v188_v25 = vpop.f32.mrf.mxu2 }
 0x19a   :  { %v189_v26 = vadd.f32 %v270_v24, %v188_v25 }
 0x19c   :  { %193 = vst.msk [vmem:[#allocation5] sm:$0xff] %vm192_vm2, %v189_v26 }
 0x19d   :  { %204 = dma.vmem_to_hbm [thread:$0]  %s200_s29, 128, %s202_s5, [#allocation4]  }
 0x1a1   :  { %v190_v27 = vpop.f32.mrf.mxu2 }
 0x1a2   :  { %321 = dma.done.wait [#allocation4], 128  }
 0x1a3   :  { %322 = vsyncadd [#allocation4], 4294967168 }
 0x1a4   :  { %209 = vsyncpa [#allocation3], 1 }
 0x1a5   :  { %210 = vsyncpa [#allocation4], 1 }

// kernel: tpu_custom_call.1
= control target key start
LH: loop header
LB: loop body
LE: loop exit
PB: predicated region body
PF: predicated region fallthrough
CT: control target
= control target key end

     0   :  { %12 = vsyncpa [#allocation3], 0  ;;  %s409_s0 = inlined_call_operand.vmem [shape: f32[8,32], index: 0, kind: input, shape index: {}]   ;;  %s410_s1 = inlined_call_operand.hbm [shape: bf16[32,64], index: 1, kind: input, shape index: {}]   ;;  %s411_s2 = inlined_call_operand.vmem [shape: f32[1,64], index: 2, kind: input, shape index: {}]   ;;  %s412_s3 = inlined_call_operand.vmem [shape: bf16[64,64], index: 3, kind: input, shape index: {}]   ;;  %s413_s4 = inlined_call_operand.vmem [shape: f32[1,64], index: 4, kind: input, shape index: {}]   ;;  %s414_s5 = inlined_call_operand.vmem [shape: bf16[64,16], index: 5, kind: input, shape index: {}]   ;;  %s415_s6 = inlined_call_operand.vmem [shape: f32[1,16], index: 6, kind: input, shape index: {}]   ;;  %s416_s7 = inlined_call_operand.hbm [shape: f32[8,16], index: 7, kind: output, shape index: {}]  }
   0x1   :  { %13 = vsyncpa [#allocation4], 0  ;;  %s20_s26 = sshll.u32 %s410_s1, 4  ;;  %s323_s27 = smov [#allocation2]   ;;  %s21_s26 = int_to_ptr.hbm [resolvable:$true] %s20_s26 }
   0x2   :  { %s22_s28 = sshll.u32 %s323_s27, 4  ;;  %s324_s29 = smov 64   ;;  %s23_s28 = int_to_ptr.vmem [resolvable:$true] %s22_s28 }
   0x3   :  { %s325_s30 = smov 4  }
   0x4   :  { %28 = dma.hbm_to_vmem [thread:$0]  %s21_s26, 256, %s23_s28, [#allocation3], %s324_s29, %s324_s29, %s325_s30  }
   0x5   :  { %319 = dma.done.wait [#allocation3], 256  }
   0x6   :  { %320 = vsyncadd [#allocation3], 4294967040  ;;  %v255_v0 = vld [vmem:[#allocation2 + $0x8] sm:$0xff]  ;;  %v254_v1 = vld [vmem:[#allocation2] sm:$0xff]  ;;  %vm66_vm0 = vcmask 261120   ;;  %vm121_vm1 = vcmask 523264  }
   0x7   :  { %v259_v2 = vld [vmem:[%s412_s3 + $0x18] sm:$0xff]  ;;  %76 = vmatpush.bf16.msra.mxu0 %v255_v0  ;;  %v44_v3 = vld [vmem:[%s409_s0] sm:$0xff]  ;;  %v258_v4 = vld [vmem:[%s412_s3 + $0x10] sm:$0xff]  ;;  %s326_s28 = smov [#allocation5]   ;;  %vm192_vm2 = vcmask 130048  }
   0x8   :  { %129 = vmatpush.bf16.msra.mxu1 %v259_v2  ;;  %v50_v5 = vpack.c.bf16 %v44_v3, %v44_v3  ;;  %v257_v6 = vld [vmem:[%s412_s3 + $0x8] sm:$0xff]  ;;  %v256_v7 = vld [vmem:[%s412_s3] sm:$0xff]  ;;  %v263_v8 = vld [vmem:[%s414_s5 + $0x18] sm:$0xff]  ;;  %s199_s29 = sshll.u32 %s326_s28, 4  ;;  %s200_s29 = int_to_ptr.vmem [resolvable:$true] %s199_s29 }
   0x9   :  { %183 = vmatpush.bf16.msra.mxu2 %v263_v8  ;;  %v262_v9 = vld [vmem:[%s414_s5 + $0x10] sm:$0xff]  ;;  %v268_v10 = vld [vmem:[%s411_s2] ss:$0 sm:$0xff]  ;;  %v261_v16 = vld [vmem:[%s414_s5 + $0x8] sm:$0xff] }
   0xa   :  { %v260_v17 = vld [vmem:[%s414_s5] sm:$0xff]  ;;  %s201_s5 = sshll.u32 %s416_s7, 4  ;;  %s202_s5 = int_to_ptr.hbm [resolvable:$true] %s201_s5 }
   0xb   :  { %77 = vmatpush.bf16.msra.mxu0 %v254_v1  ;;  %v269_v18 = vld [vmem:[%s413_s4] ss:$0 sm:$0xff] }
   0xc   :  { %130 = vmatpush.bf16.msra.mxu1 %v258_v4  ;;  %v270_v24 = vld [vmem:[%s415_s6] ss:$0 sm:$0xff] }
   0xd   :  { %184 = vmatpush.bf16.msra.mxu2 %v262_v9 }
   0xe   :  { %219 = vmatmul.msk.bf16.vlgmr.msra.gmra.mxu0 %vm66_vm0, %v50_v5 }
  0x10   :  { %131 = vmatpush.bf16.msra.mxu1 %v257_v6 }
  0x11   :  { %185 = vmatpush.bf16.msra.mxu2 %v261_v16 }
  0x14   :  { %132 = vmatpush.bf16.msra.mxu1 %v256_v7 }
  0x15   :  { %186 = vmatpush.bf16.msra.mxu2 %v260_v17 }
  0x8b   :  { %v79_v11 = vpop.f32.mrf.mxu0 }
  0x8c   :  { %v80_v12 = vadd.f32 %v268_v10, %v79_v11 }
  0x8e   :  { %v83_v13 = vmax.f32 %v80_v12, 0.0 }
  0x90   :  { %v93_v14 = vpack.c.bf16 %v83_v13, %v83_v13 }
  0x92   :  { %236 = vmatmul.msk.bf16.vlgmr.msra.gmra.mxu1 %vm121_vm1, %v93_v14 }
  0x93   :  { %v81_v15 = vpop.f32.mrf.mxu0 }
 0x10f   :  { %v134_v19 = vpop.f32.mrf.mxu1 }
 0x110   :  { %v135_v20 = vadd.f32 %v269_v18, %v134_v19 }
 0x112   :  { %v138_v21 = vmax.f32 %v135_v20, 0.0 }
 0x114   :  { %v148_v22 = vpack.c.bf16 %v138_v21, %v138_v21 }
 0x116   :  { %253 = vmatmul.msk.bf16.vlgmr.msra.gmra.mxu2 %vm121_vm1, %v148_v22 }
 0x117   :  { %v136_v23 = vpop.f32.mrf.mxu1 }
 0x199   :  { %v188_v25 = vpop.f32.mrf.mxu2 }
 0x19a   :  { %v189_v26 = vadd.f32 %v270_v24, %v188_v25 }
 0x19c   :  { %193 = vst.msk [vmem:[#allocation5] sm:$0xff] %vm192_vm2, %v189_v26 }
 0x19d   :  { %204 = dma.vmem_to_hbm [thread:$0]  %s200_s29, 128, %s202_s5, [#allocation4]  }
 0x1a1   :  { %v190_v27 = vpop.f32.mrf.mxu2 }
 0x1a2   :  { %321 = dma.done.wait [#allocation4], 128  }
 0x1a3   :  { %322 = vsyncadd [#allocation4], 4294967168 }
 0x1a4   :  { %209 = vsyncpa [#allocation3], 1 }
 0x1a5   :  { %210 = vsyncpa [#allocation4], 1 }

</bundles_post_ra>
